<compile_context>
chip_gen: v7x
topology: tpu7x:2x2x1
jax: 0.10.0
libtpu: 0.0.40
codegen_flags: <defaults>
</compile_context>

<pallas_src>
import jax
import jax.numpy as jnp
from jax.experimental import pallas as pl
from jax.experimental.pallas import tpu as pltpu


def _decoder_attention_kernel(
    # activations
    x_ref, hidden_ref, cell_ref, enc2d_ref, enc3d_ref,
    # pre-laid-out weights
    w_h1f_ref, ba_ref, v_ref, w_ae_ref,
    w_l0_ref, b0_ref, w_l1_ref, b1_ref, w_out_ref, bout_ref,
    # outputs
    out_ref, hout_ref, cout_ref, attnw_ref,
):
    B, T, H = enc3d_ref.shape

    x = x_ref[...]                       # (B, I)
    h0 = hidden_ref[0]                   # (B, H)
    c0 = cell_ref[0]
    h1 = hidden_ref[1]                   # == hidden[-1] for num_layers == 2
    c1 = cell_ref[1]

    # ---- Fused h1 matmul: attention hidden projection + layer-1 recurrent gates ----
    #   w_h1f = [ attn_w[:, :H].T | w_hh_l1.T ]  -> (H, 5H)
    h1_proj = jnp.dot(h1, w_h1f_ref[...], preferred_element_type=jnp.float32)   # (B, 5H)
    e_h = h1_proj[:, :H]                 # (B, H)
    g1_rec = h1_proj[:, H:]              # (B, 4H)

    # ---- Attention: energy = tanh(W_a [h_last ; enc] + b), score = v . energy ----
    e_e = jnp.dot(enc2d_ref[...], w_ae_ref[...],
                  preferred_element_type=jnp.float32).reshape(B, T, H)           # (B, T, H)
    energy = jnp.tanh(e_h[:, None, :] + e_e + ba_ref[...][None])                 # (B, T, H)
    scores = jnp.sum(energy * v_ref[...][None], axis=-1)                         # (B, T)

    # softmax over time
    m = jnp.max(scores, axis=1, keepdims=True)
    probs = jnp.exp(scores - m)
    attn_w = probs * pl.reciprocal(jnp.sum(probs, axis=1, keepdims=True), approx=False)

    # context = attn_w bmm enc  -> batched MXU contraction (B,1,T) x (B,T,H) -> (B,1,H)
    context = jnp.einsum("bqt,bth->bqh", attn_w[:, None, :], enc3d_ref[...],
                         preferred_element_type=jnp.float32)[:, 0, :]            # (B, H)

    # ---- LSTM layer 0: single fused gate matmul, gate order (i, f, g, o) ----
    lstm_in = jnp.concatenate([x, context, h0], axis=1)                          # (B, I+2H)
    gates0 = jnp.dot(lstm_in, w_l0_ref[...],
                     preferred_element_type=jnp.float32) + b0_ref[...]           # (B, 4H)
    s0 = jax.nn.sigmoid(gates0)
    t0 = jnp.tanh(gates0)
    c0_new = s0[:, H:2 * H] * c0 + s0[:, :H] * t0[:, 2 * H:3 * H]
    h0_new = s0[:, 3 * H:] * jnp.tanh(c0_new)

    # ---- LSTM layer 1 (recurrent term precomputed in h1_proj) ----
    gates1 = (jnp.dot(h0_new, w_l1_ref[...], preferred_element_type=jnp.float32)
              + g1_rec + b1_ref[...])                                            # (B, 4H)
    s1 = jax.nn.sigmoid(gates1)
    t1 = jnp.tanh(gates1)
    c1_new = s1[:, H:2 * H] * c1 + s1[:, :H] * t1[:, 2 * H:3 * H]
    h1_new = s1[:, 3 * H:] * jnp.tanh(c1_new)

    # ---- Output projection: single fused matmul over [lstm_out ; context] ----
    out_in = jnp.concatenate([h1_new, context], axis=1)                          # (B, 2H)
    out = jnp.dot(out_in, w_out_ref[...],
                  preferred_element_type=jnp.float32) + bout_ref[...]            # (B, O)

    out_ref[...] = out
    hout_ref[0] = h0_new
    hout_ref[1] = h1_new
    cout_ref[0] = c0_new
    cout_ref[1] = c1_new
    attnw_ref[...] = attn_w


def prepare_decoder_attention_params(p):
    """One-time weight layout prep (call at model init, NOT per step)."""
    H = p["attn_b"].shape[0]
    return {
        # fused: attention hidden half + layer-1 recurrent, both consumed by hidden[-1]
        "w_h1_fused": jnp.concatenate([p["attn_w"][:, :H].T, p["w_hh_l1"].T], axis=1),  # (H, 5H)
        "attn_b": p["attn_b"][None, :],                                                 # (1, H)
        "v_w": p["v_w"],                                                                # (1, H)
        "w_attn_e": p["attn_w"][:, H:].T,                                               # (H, H)
        # LSTM layer 0: rows ordered [x ; context ; h0]  -> (I+2H, 4H)
        "w_l0": jnp.concatenate([p["w_ih_l0"].T, p["w_hh_l0"].T], axis=0),
        "b0": (p["b_ih_l0"] + p["b_hh_l0"])[None, :],
        # LSTM layer 1 input half (recurrent half fused above)
        "w_l1": p["w_ih_l1"].T,                                                         # (H, 4H)
        "b1": (p["b_ih_l1"] + p["b_hh_l1"])[None, :],
        # output projection: rows ordered [lstm_out ; context]
        "w_out": p["lin_w"].T,                                                          # (2H, O)
        "b_out": p["lin_b"][None, :],
    }


def decoder_attention_forward(x, hidden, cell, encoder_outputs, prepared):
    """Mirrors DecoderAttention.forward(x, hidden, cell, encoder_outputs)."""
    B, _ = x.shape
    L, _, H = hidden.shape
    T = encoder_outputs.shape[0]
    O = prepared["b_out"].shape[1]

    enc3d = jnp.transpose(encoder_outputs, (1, 0, 2))   # (B, T, H)
    enc2d = enc3d.reshape(B * T, H)                     # lane-friendly 2-D view for the matmul

    inputs = (
        x, hidden, cell, enc2d, enc3d,
        prepared["w_h1_fused"], prepared["attn_b"], prepared["v_w"], prepared["w_attn_e"],
        prepared["w_l0"], prepared["b0"], prepared["w_l1"], prepared["b1"],
        prepared["w_out"], prepared["b_out"],
    )

    out_shapes = (
        jax.ShapeDtypeStruct((B, O), jnp.float32),
        jax.ShapeDtypeStruct((L, B, H), jnp.float32),
        jax.ShapeDtypeStruct((L, B, H), jnp.float32),
        jax.ShapeDtypeStruct((B, T), jnp.float32),
    )

    output, hidden_new, cell_new, attn_w = pl.pallas_call(
        _decoder_attention_kernel,
        out_shape=out_shapes,
        in_specs=[pl.BlockSpec(memory_space=pltpu.MemorySpace.VMEM)] * len(inputs),
        out_specs=tuple(pl.BlockSpec(memory_space=pltpu.MemorySpace.VMEM)
                        for _ in out_shapes),
    )(*inputs)

    # torch returns attn_weights with shape (B, 1, T)
    return output, hidden_new, cell_new, attn_w[:, None, :]


def reference_forward(x, hidden, cell, enc_outputs, p):
    """Pure-JAX reference following the PyTorch code line by line."""
    H = hidden.shape[-1]
    T, B = enc_outputs.shape[0], x.shape[0]
    h = jnp.broadcast_to(hidden[-1], (T, B, H)).transpose(1, 0, 2)     # (B, T, H)
    enc_t = enc_outputs.transpose(1, 0, 2)                             # (B, T, H)
    cat = jnp.concatenate([h, enc_t], axis=2)                          # (B, T, 2H)
    energy = jnp.tanh(cat @ p["attn_w"].T + p["attn_b"])
    scores = (energy @ p["v_w"].T)[..., 0]                             # (B, T)
    weights = jax.nn.softmax(scores, axis=1)
    attn_weights = weights[:, None, :]                                 # (B, 1, T)
    context = jnp.einsum("bot,bth->boh", attn_weights, enc_t)          # (B, 1, H)
    lstm_in = jnp.concatenate([x, context[:, 0, :]], axis=1)           # (B, I+H)

    h0, c0 = hidden[0], cell[0]
    g0 = lstm_in @ p["w_ih_l0"].T + p["b_ih_l0"] + h0 @ p["w_hh_l0"].T + p["b_hh_l0"]
    i0 = jax.nn.sigmoid(g0[:, :H]); f0 = jax.nn.sigmoid(g0[:, H:2 * H])
    gg0 = jnp.tanh(g0[:, 2 * H:3 * H]); o0 = jax.nn.sigmoid(g0[:, 3 * H:])
    c0n = f0 * c0 + i0 * gg0
    h0n = o0 * jnp.tanh(c0n)

    h1, c1 = hidden[1], cell[1]
    g1 = h0n @ p["w_ih_l1"].T + p["b_ih_l1"] + h1 @ p["w_hh_l1"].T + p["b_hh_l1"]
    i1 = jax.nn.sigmoid(g1[:, :H]); f1 = jax.nn.sigmoid(g1[:, H:2 * H])
    gg1 = jnp.tanh(g1[:, 2 * H:3 * H]); o1 = jax.nn.sigmoid(g1[:, 3 * H:])
    c1n = f1 * c1 + i1 * gg1
    h1n = o1 * jnp.tanh(c1n)

    out = jnp.concatenate([h1n, context[:, 0, :]], axis=1) @ p["lin_w"].T + p["lin_b"]
    return out, jnp.stack([h0n, h1n]), jnp.stack([c0n, c1n]), attn_weights


if __name__ == "__main__":
    B, T, I, H, O, L = 2, 8, 16, 32, 8, 2

    key = jax.random.PRNGKey(0)
    keys = jax.random.split(key, 17)

    def u(k, shape):
        return jax.random.uniform(k, shape, jnp.float32, -0.1, 0.1)

    params = {
        "attn_w": u(keys[0], (H, 2 * H)), "attn_b": u(keys[1], (H,)),
        "v_w": u(keys[2], (1, H)),
        "w_ih_l0": u(keys[3], (4 * H, I + H)), "w_hh_l0": u(keys[4], (4 * H, H)),
        "b_ih_l0": u(keys[5], (4 * H,)), "b_hh_l0": u(keys[6], (4 * H,)),
        "w_ih_l1": u(keys[7], (4 * H, H)), "w_hh_l1": u(keys[8], (4 * H, H)),
        "b_ih_l1": u(keys[9], (4 * H,)), "b_hh_l1": u(keys[10], (4 * H,)),
        "lin_w": u(keys[11], (O, 2 * H)), "lin_b": u(keys[12], (O,)),
    }
    x = u(keys[13], (B, I))
    hidden = u(keys[14], (L, B, H))
    cell = u(keys[15], (L, B, H))
    encoder_outputs = u(keys[16], (T, B, H))

    # One-time layout prep (init-time), then the jitted per-step forward.
    prepared = jax.tree_util.tree_map(jnp.asarray, prepare_decoder_attention_params(params))
    fwd = jax.jit(decoder_attention_forward)

    out, h_n, c_n, attn_w = fwd(x, hidden, cell, encoder_outputs, prepared)
    jax.block_until_ready((out, h_n, c_n, attn_w))

    ref = reference_forward(x, hidden, cell, encoder_outputs, params)
    for got, want in zip((out, h_n, c_n, attn_w), ref):
        assert got.shape == want.shape, (got.shape, want.shape)
        assert jnp.allclose(got, want, rtol=1e-4, atol=1e-5), \
            float(jnp.max(jnp.abs(got - want)))

    print("KERNEL_OK")
</pallas_src>

<mosaic_0001>
module attributes {stable_mosaic.version = 11 : i64} {
  func.func @_decoder_attention_kernel(%arg0: memref<2x16xf32, #tpu.memory_space<vmem>>, %arg1: memref<2x2x32xf32, #tpu.memory_space<vmem>>, %arg2: memref<2x2x32xf32, #tpu.memory_space<vmem>>, %arg3: memref<16x32xf32, #tpu.memory_space<vmem>>, %arg4: memref<2x8x32xf32, #tpu.memory_space<vmem>>, %arg5: memref<32x160xf32, #tpu.memory_space<vmem>>, %arg6: memref<1x32xf32, #tpu.memory_space<vmem>>, %arg7: memref<1x32xf32, #tpu.memory_space<vmem>>, %arg8: memref<32x32xf32, #tpu.memory_space<vmem>>, %arg9: memref<80x128xf32, #tpu.memory_space<vmem>>, %arg10: memref<1x128xf32, #tpu.memory_space<vmem>>, %arg11: memref<32x128xf32, #tpu.memory_space<vmem>>, %arg12: memref<1x128xf32, #tpu.memory_space<vmem>>, %arg13: memref<64x8xf32, #tpu.memory_space<vmem>>, %arg14: memref<1x8xf32, #tpu.memory_space<vmem>>, %arg15: memref<2x8xf32, #tpu.memory_space<vmem>>, %arg16: memref<2x2x32xf32, #tpu.memory_space<vmem>>, %arg17: memref<2x2x32xf32, #tpu.memory_space<vmem>>, %arg18: memref<2x8xf32, #tpu.memory_space<vmem>>) attributes {dimension_semantics = [], scalar_prefetch = 0 : i64, scratch_operands = 0 : i64, tpu.core_type = #tpu.core_type<tc>} {
    %c0 = arith.constant 0 : index
    %c0_0 = arith.constant 0 : index
    %0 = vector.load %arg0[%c0, %c0_0] : memref<2x16xf32, #tpu.memory_space<vmem>>, vector<2x16xf32>
    %c0_1 = arith.constant 0 : index
    %c0_2 = arith.constant 0 : index
    %c0_3 = arith.constant 0 : index
    %1 = vector.load %arg1[%c0_1, %c0_2, %c0_3] : memref<2x2x32xf32, #tpu.memory_space<vmem>>, vector<1x2x32xf32>
    %2 = vector.shape_cast %1 : vector<1x2x32xf32> to vector<2x32xf32>
    %c0_4 = arith.constant 0 : index
    %c0_5 = arith.constant 0 : index
    %c0_6 = arith.constant 0 : index
    %3 = vector.load %arg2[%c0_4, %c0_5, %c0_6] : memref<2x2x32xf32, #tpu.memory_space<vmem>>, vector<1x2x32xf32>
    %4 = vector.shape_cast %3 : vector<1x2x32xf32> to vector<2x32xf32>
    %c1 = arith.constant 1 : index
    %c0_7 = arith.constant 0 : index
    %c0_8 = arith.constant 0 : index
    %5 = vector.load %arg1[%c1, %c0_7, %c0_8] : memref<2x2x32xf32, #tpu.memory_space<vmem>>, vector<1x2x32xf32>
    %6 = vector.shape_cast %5 : vector<1x2x32xf32> to vector<2x32xf32>
    %c1_9 = arith.constant 1 : index
    %c0_10 = arith.constant 0 : index
    %c0_11 = arith.constant 0 : index
    %7 = vector.load %arg2[%c1_9, %c0_10, %c0_11] : memref<2x2x32xf32, #tpu.memory_space<vmem>>, vector<1x2x32xf32>
    %8 = vector.shape_cast %7 : vector<1x2x32xf32> to vector<2x32xf32>
    %c0_12 = arith.constant 0 : index
    %c0_13 = arith.constant 0 : index
    %9 = vector.load %arg5[%c0_12, %c0_13] : memref<32x160xf32, #tpu.memory_space<vmem>>, vector<32x160xf32>
    %cst = arith.constant dense<0.000000e+00> : vector<2x160xf32>
    %10 = tpu.matmul %6, %9, %cst {dimension_numbers = #tpu.dot_dimension_numbers<[1], [0], [0], [1], [0, 0, 1, 1], [], []>} : vector<2x32xf32>, vector<32x160xf32>, vector<2x160xf32> -> vector<2x160xf32>
    %11 = vector.extract_strided_slice %10 {offsets = [0, 0], sizes = [2, 32], strides = [1, 1]} : vector<2x160xf32> to vector<2x32xf32>
    %12 = vector.extract_strided_slice %10 {offsets = [0, 32], sizes = [2, 128], strides = [1, 1]} : vector<2x160xf32> to vector<2x128xf32>
    %c0_14 = arith.constant 0 : index
    %c0_15 = arith.constant 0 : index
    %13 = vector.load %arg3[%c0_14, %c0_15] : memref<16x32xf32, #tpu.memory_space<vmem>>, vector<16x32xf32>
    %c0_16 = arith.constant 0 : index
    %c0_17 = arith.constant 0 : index
    %14 = vector.load %arg8[%c0_16, %c0_17] : memref<32x32xf32, #tpu.memory_space<vmem>>, vector<32x32xf32>
    %cst_18 = arith.constant dense<0.000000e+00> : vector<16x32xf32>
    %15 = tpu.matmul %13, %14, %cst_18 {dimension_numbers = #tpu.dot_dimension_numbers<[1], [0], [0], [1], [0, 0, 1, 1], [], []>} : vector<16x32xf32>, vector<32x32xf32>, vector<16x32xf32> -> vector<16x32xf32>
    %16 = vector.shape_cast %15 : vector<16x32xf32> to vector<2x8x32xf32>
    %17 = vector.shape_cast %11 : vector<2x32xf32> to vector<2x1x32xf32>
    %18 = vector.broadcast %17 : vector<2x1x32xf32> to vector<2x8x32xf32>
    %19 = arith.addf %18, %16 : vector<2x8x32xf32>
    %c0_19 = arith.constant 0 : index
    %c0_20 = arith.constant 0 : index
    %20 = vector.load %arg6[%c0_19, %c0_20] : memref<1x32xf32, #tpu.memory_space<vmem>>, vector<1x32xf32>
    %21 = vector.shape_cast %20 : vector<1x32xf32> to vector<1x1x32xf32>
    %22 = vector.broadcast %21 : vector<1x1x32xf32> to vector<2x8x32xf32>
    %23 = arith.addf %19, %22 : vector<2x8x32xf32>
    %24 = math.tanh %23 : vector<2x8x32xf32>
    %c0_21 = arith.constant 0 : index
    %c0_22 = arith.constant 0 : index
    %25 = vector.load %arg7[%c0_21, %c0_22] : memref<1x32xf32, #tpu.memory_space<vmem>>, vector<1x32xf32>
    %26 = vector.shape_cast %25 : vector<1x32xf32> to vector<1x1x32xf32>
    %27 = vector.broadcast %26 : vector<1x1x32xf32> to vector<2x8x32xf32>
    %28 = arith.mulf %24, %27 : vector<2x8x32xf32>
    %cst_23 = arith.constant dense<0.000000e+00> : vector<2x8xf32>
    %29 = vector.multi_reduction <add>, %28, %cst_23 [2] : vector<2x8x32xf32> to vector<2x8xf32>
    %cst_24 = arith.constant dense<0xFF800000> : vector<2xf32>
    %30 = vector.multi_reduction <maximumf>, %29, %cst_24 [1] : vector<2x8xf32> to vector<2xf32>
    %31 = vector.shape_cast %30 : vector<2xf32> to vector<2x1xf32>
    %32 = vector.broadcast %31 : vector<2x1xf32> to vector<2x8xf32>
    %33 = arith.subf %29, %32 : vector<2x8xf32>
    %34 = math.exp %33 : vector<2x8xf32>
    %cst_25 = arith.constant dense<0.000000e+00> : vector<2xf32>
    %35 = vector.multi_reduction <add>, %34, %cst_25 [1] : vector<2x8xf32> to vector<2xf32>
    %36 = vector.shape_cast %35 : vector<2xf32> to vector<2x1xf32>
    %37 = tpu.reciprocal %36 : vector<2x1xf32> -> vector<2x1xf32>
    %38 = vector.broadcast %37 : vector<2x1xf32> to vector<2x8xf32>
    %39 = arith.mulf %34, %38 : vector<2x8xf32>
    %40 = vector.shape_cast %39 : vector<2x8xf32> to vector<2x1x8xf32>
    %c0_26 = arith.constant 0 : index
    %c0_27 = arith.constant 0 : index
    %c0_28 = arith.constant 0 : index
    %41 = vector.load %arg4[%c0_26, %c0_27, %c0_28] : memref<2x8x32xf32, #tpu.memory_space<vmem>>, vector<2x8x32xf32>
    "tpu.trace_start"() <{level = 10 : i32, message = "bqt,bth->bqh"}> : () -> ()
    %cst_29 = arith.constant dense<0.000000e+00> : vector<2x1x32xf32>
    %42 = tpu.matmul %40, %41, %cst_29 {dimension_numbers = #tpu.dot_dimension_numbers<[2], [1], [1], [2], [0, 0, 0, 1, 1, 2], [0], [0]>} : vector<2x1x8xf32>, vector<2x8x32xf32>, vector<2x1x32xf32> -> vector<2x1x32xf32>
    "tpu.trace_stop"() : () -> ()
    %43 = vector.shape_cast %42 : vector<2x1x32xf32> to vector<2x32xf32>
    %44 = tpu.concatenate %0, %43, %2 in 1 : vector<2x16xf32>, vector<2x32xf32>, vector<2x32xf32> -> vector<2x80xf32>
    %c0_30 = arith.constant 0 : index
    %c0_31 = arith.constant 0 : index
    %45 = vector.load %arg9[%c0_30, %c0_31] : memref<80x128xf32, #tpu.memory_space<vmem>>, vector<80x128xf32>
    %cst_32 = arith.constant dense<0.000000e+00> : vector<2x128xf32>
    %46 = tpu.matmul %44, %45, %cst_32 {dimension_numbers = #tpu.dot_dimension_numbers<[1], [0], [0], [1], [0, 0, 1, 1], [], []>} : vector<2x80xf32>, vector<80x128xf32>, vector<2x128xf32> -> vector<2x128xf32>
    %c0_33 = arith.constant 0 : index
    %c0_34 = arith.constant 0 : index
    %47 = vector.load %arg10[%c0_33, %c0_34] : memref<1x128xf32, #tpu.memory_space<vmem>>, vector<1x128xf32>
    %48 = vector.broadcast %47 : vector<1x128xf32> to vector<2x128xf32>
    %49 = arith.addf %46, %48 : vector<2x128xf32>
    %50 = arith.negf %49 : vector<2x128xf32>
    %51 = math.exp %50 : vector<2x128xf32>
    %cst_35 = arith.constant 1.000000e+00 : f32
    %52 = vector.broadcast %cst_35 : f32 to vector<2x128xf32>
    %53 = arith.addf %52, %51 : vector<2x128xf32>
    %54 = arith.divf %52, %53 : vector<2x128xf32>
    %55 = math.tanh %49 : vector<2x128xf32>
    %56 = vector.extract_strided_slice %54 {offsets = [0, 32], sizes = [2, 32], strides = [1, 1]} : vector<2x128xf32> to vector<2x32xf32>
    %57 = arith.mulf %56, %4 : vector<2x32xf32>
    %58 = vector.extract_strided_slice %54 {offsets = [0, 0], sizes = [2, 32], strides = [1, 1]} : vector<2x128xf32> to vector<2x32xf32>
    %59 = vector.extract_strided_slice %55 {offsets = [0, 64], sizes = [2, 32], strides = [1, 1]} : vector<2x128xf32> to vector<2x32xf32>
    %60 = arith.mulf %58, %59 : vector<2x32xf32>
    %61 = arith.addf %57, %60 : vector<2x32xf32>
    %62 = vector.extract_strided_slice %54 {offsets = [0, 96], sizes = [2, 32], strides = [1, 1]} : vector<2x128xf32> to vector<2x32xf32>
    %63 = math.tanh %61 : vector<2x32xf32>
    %64 = arith.mulf %62, %63 : vector<2x32xf32>
    %c0_36 = arith.constant 0 : index
    %c0_37 = arith.constant 0 : index
    %65 = vector.load %arg11[%c0_36, %c0_37] : memref<32x128xf32, #tpu.memory_space<vmem>>, vector<32x128xf32>
    %cst_38 = arith.constant dense<0.000000e+00> : vector<2x128xf32>
    %66 = tpu.matmul %64, %65, %cst_38 {dimension_numbers = #tpu.dot_dimension_numbers<[1], [0], [0], [1], [0, 0, 1, 1], [], []>} : vector<2x32xf32>, vector<32x128xf32>, vector<2x128xf32> -> vector<2x128xf32>
    %67 = arith.addf %66, %12 : vector<2x128xf32>
    %c0_39 = arith.constant 0 : index
    %c0_40 = arith.constant 0 : index
    %68 = vector.load %arg12[%c0_39, %c0_40] : memref<1x128xf32, #tpu.memory_space<vmem>>, vector<1x128xf32>
    %69 = vector.broadcast %68 : vector<1x128xf32> to vector<2x128xf32>
    %70 = arith.addf %67, %69 : vector<2x128xf32>
    %71 = arith.negf %70 : vector<2x128xf32>
    %72 = math.exp %71 : vector<2x128xf32>
    %cst_41 = arith.constant 1.000000e+00 : f32
    %73 = vector.broadcast %cst_41 : f32 to vector<2x128xf32>
    %74 = arith.addf %73, %72 : vector<2x128xf32>
    %75 = arith.divf %73, %74 : vector<2x128xf32>
    %76 = math.tanh %70 : vector<2x128xf32>
    %77 = vector.extract_strided_slice %75 {offsets = [0, 32], sizes = [2, 32], strides = [1, 1]} : vector<2x128xf32> to vector<2x32xf32>
    %78 = arith.mulf %77, %8 : vector<2x32xf32>
    %79 = vector.extract_strided_slice %75 {offsets = [0, 0], sizes = [2, 32], strides = [1, 1]} : vector<2x128xf32> to vector<2x32xf32>
    %80 = vector.extract_strided_slice %76 {offsets = [0, 64], sizes = [2, 32], strides = [1, 1]} : vector<2x128xf32> to vector<2x32xf32>
    %81 = arith.mulf %79, %80 : vector<2x32xf32>
    %82 = arith.addf %78, %81 : vector<2x32xf32>
    %83 = vector.extract_strided_slice %75 {offsets = [0, 96], sizes = [2, 32], strides = [1, 1]} : vector<2x128xf32> to vector<2x32xf32>
    %84 = math.tanh %82 : vector<2x32xf32>
    %85 = arith.mulf %83, %84 : vector<2x32xf32>
    %86 = tpu.concatenate %85, %43 in 1 : vector<2x32xf32>, vector<2x32xf32> -> vector<2x64xf32>
    %c0_42 = arith.constant 0 : index
    %c0_43 = arith.constant 0 : index
    %87 = vector.load %arg13[%c0_42, %c0_43] : memref<64x8xf32, #tpu.memory_space<vmem>>, vector<64x8xf32>
    %cst_44 = arith.constant dense<0.000000e+00> : vector<2x8xf32>
    %88 = tpu.matmul %86, %87, %cst_44 {dimension_numbers = #tpu.dot_dimension_numbers<[1], [0], [0], [1], [0, 0, 1, 1], [], []>} : vector<2x64xf32>, vector<64x8xf32>, vector<2x8xf32> -> vector<2x8xf32>
    %c0_45 = arith.constant 0 : index
    %c0_46 = arith.constant 0 : index
    %89 = vector.load %arg14[%c0_45, %c0_46] : memref<1x8xf32, #tpu.memory_space<vmem>>, vector<1x8xf32>
    %90 = vector.broadcast %89 : vector<1x8xf32> to vector<2x8xf32>
    %91 = arith.addf %88, %90 : vector<2x8xf32>
    %c0_47 = arith.constant 0 : index
    %c0_48 = arith.constant 0 : index
    %92 = vector.load %arg15[%c0_47, %c0_48] : memref<2x8xf32, #tpu.memory_space<vmem>>, vector<2x8xf32>
    tpu.vector_store %arg15[%c0_47, %c0_48], %91 {strides = array<i32>} : memref<2x8xf32, #tpu.memory_space<vmem>>, vector<2x8xf32>,
    %c0_49 = arith.constant 0 : index
    %c0_50 = arith.constant 0 : index
    %c0_51 = arith.constant 0 : index
    %93 = vector.load %arg16[%c0_49, %c0_50, %c0_51] : memref<2x2x32xf32, #tpu.memory_space<vmem>>, vector<1x2x32xf32>
    %94 = vector.shape_cast %93 : vector<1x2x32xf32> to vector<2x32xf32>
    %95 = vector.shape_cast %64 : vector<2x32xf32> to vector<1x2x32xf32>
    tpu.vector_store %arg16[%c0_49, %c0_50, %c0_51], %95 {strides = array<i32>} : memref<2x2x32xf32, #tpu.memory_space<vmem>>, vector<1x2x32xf32>,
    %c1_52 = arith.constant 1 : index
    %c0_53 = arith.constant 0 : index
    %c0_54 = arith.constant 0 : index
    %96 = vector.load %arg16[%c1_52, %c0_53, %c0_54] : memref<2x2x32xf32, #tpu.memory_space<vmem>>, vector<1x2x32xf32>
    %97 = vector.shape_cast %96 : vector<1x2x32xf32> to vector<2x32xf32>
    %98 = vector.shape_cast %85 : vector<2x32xf32> to vector<1x2x32xf32>
    tpu.vector_store %arg16[%c1_52, %c0_53, %c0_54], %98 {strides = array<i32>} : memref<2x2x32xf32, #tpu.memory_space<vmem>>, vector<1x2x32xf32>,
    %c0_55 = arith.constant 0 : index
    %c0_56 = arith.constant 0 : index
    %c0_57 = arith.constant 0 : index
    %99 = vector.load %arg17[%c0_55, %c0_56, %c0_57] : memref<2x2x32xf32, #tpu.memory_space<vmem>>, vector<1x2x32xf32>
    %100 = vector.shape_cast %99 : vector<1x2x32xf32> to vector<2x32xf32>
    %101 = vector.shape_cast %61 : vector<2x32xf32> to vector<1x2x32xf32>
    tpu.vector_store %arg17[%c0_55, %c0_56, %c0_57], %101 {strides = array<i32>} : memref<2x2x32xf32, #tpu.memory_space<vmem>>, vector<1x2x32xf32>,
    %c1_58 = arith.constant 1 : index
    %c0_59 = arith.constant 0 : index
    %c0_60 = arith.constant 0 : index
    %102 = vector.load %arg17[%c1_58, %c0_59, %c0_60] : memref<2x2x32xf32, #tpu.memory_space<vmem>>, vector<1x2x32xf32>
    %103 = vector.shape_cast %102 : vector<1x2x32xf32> to vector<2x32xf32>
    %104 = vector.shape_cast %82 : vector<2x32xf32> to vector<1x2x32xf32>
    tpu.vector_store %arg17[%c1_58, %c0_59, %c0_60], %104 {strides = array<i32>} : memref<2x2x32xf32, #tpu.memory_space<vmem>>, vector<1x2x32xf32>,
    %c0_61 = arith.constant 0 : index
    %c0_62 = arith.constant 0 : index
    %105 = vector.load %arg18[%c0_61, %c0_62] : memref<2x8xf32, #tpu.memory_space<vmem>>, vector<2x8xf32>
    tpu.vector_store %arg18[%c0_61, %c0_62], %39 {strides = array<i32>} : memref<2x8xf32, #tpu.memory_space<vmem>>, vector<2x8xf32>,
    return
  }
}

</mosaic_0001>

<bundles_post_ra>
// kernel: decoder_attention_forward.1
= control target key start
LH: loop header
LB: loop body
LE: loop exit
PB: predicated region body
PF: predicated region fallthrough
CT: control target
= control target key end

     0   :  { %s1979_s0 = inlined_call_operand.hbm [shape: f32[2,16], index: 0, kind: input, shape index: {}]   ;;  %s1980_s1 = inlined_call_operand.vmem [shape: f32[2,2,32], index: 1, kind: input, shape index: {}]   ;;  %s1981_s2 = inlined_call_operand.vmem [shape: f32[2,2,32], index: 2, kind: input, shape index: {}]   ;;  %s1982_s3 = inlined_call_operand.vmem [shape: f32[16,32], index: 3, kind: input, shape index: {}]   ;;  %s1983_s4 = inlined_call_operand.vmem [shape: f32[2,8,32], index: 4, kind: input, shape index: {}]   ;;  %s1984_s5 = inlined_call_operand.vmem [shape: f32[32,160], index: 5, kind: input, shape index: {}]   ;;  %s1985_s6 = inlined_call_operand.vmem [shape: f32[1,32], index: 6, kind: input, shape index: {}]   ;;  %s1986_s7 = inlined_call_operand.hbm [shape: f32[1,32], index: 7, kind: input, shape index: {}]   ;;  %s1987_s8 = inlined_call_operand.hbm [shape: f32[32,32], index: 8, kind: input, shape index: {}]   ;;  %s1988_s9 = inlined_call_operand.vmem [shape: f32[80,128], index: 9, kind: input, shape index: {}]   ;;  %s1989_s10 = inlined_call_operand.hbm [shape: f32[1,128], index: 10, kind: input, shape index: {}]   ;;  %s1990_s11 = inlined_call_operand.hbm [shape: f32[32,128], index: 11, kind: input, shape index: {}]   ;;  %s1991_s12 = inlined_call_operand.hbm [shape: f32[1,128], index: 12, kind: input, shape index: {}]   ;;  %s1992_s13 = inlined_call_operand.vmem [shape: f32[64,8], index: 13, kind: input, shape index: {}]   ;;  %s1993_s14 = inlined_call_operand.hbm [shape: f32[1,8], index: 14, kind: input, shape index: {}]   ;;  %s1994_s15 = inlined_call_operand.hbm [shape: f32[2,8], index: 15, kind: output, shape index: {0}]   ;;  %s1995_s16 = inlined_call_operand.hbm [shape: f32[2,2,32], index: 16, kind: output, shape index: {1}]   ;;  %s1996_s17 = inlined_call_operand.hbm [shape: f32[2,2,32], index: 17, kind: output, shape index: {2}]   ;;  %s1997_s18 = inlined_call_operand.hbm [shape: f32[2,8], index: 18, kind: output, shape index: {3}]  }
   0x1   :  { %2001 = sst [smem:[#allocation27_spill]] %s1979_s0 }
   0x2   :  { %2002 = sst [smem:[#allocation28_spill]] %s1980_s1 }
   0x3   :  { %2003 = sst [smem:[#allocation29_spill]] %s1981_s2 }
   0x4   :  { %24 = vsyncpa [#allocation3], 0 }
   0x5   :  { %25 = vsyncpa [#allocation6], 0 }
   0x6   :  { %26 = vsyncpa [#allocation9], 0 }
   0x7   :  { %27 = vsyncpa [#allocation12], 0 }
   0x8   :  { %28 = vsyncpa [#allocation4], 0 }
   0x9   :  { %29 = vsyncpa [#allocation16], 0 }
   0xa   :  { %30 = vsyncpa [#allocation19], 0  ;;  %s1534_s27 = smov [#allocation5]   ;;  %s1535_s29 = smov [#allocation8]  }
   0xb   :  { %s59_s28 = sshll.u32 %s1534_s27, 4  ;;  %s83_s30 = sshll.u32 %s1535_s29, 4  ;;  %s60_s28 = int_to_ptr.vmem [resolvable:$true] %s59_s28  ;;  %s84_s30 = int_to_ptr.vmem [resolvable:$true] %s83_s30 }
   0xc   :  { %s1278_s1 = scalar_lea.hbm %s1986_s7, 16 }
   0xd   :  { %p1279_p0 = scmp.ne.s32.totalorder %s1986_s7, %s1278_s1  ;;  %p1282_p1 = scmp.lt.u32.totalorder %s1278_s1, %s1986_s7 }
   0xf   :  { %p1284_p2 = pnand %p1282_p1, %p1279_p0 }
  0x11   :  { %1287 = shalt.err (!%p1284_p2)
}
  0x12   :  { %s1288_s23 = scalar_lea.vmem %s60_s28, 16  ;;  %s1292_s24 = scalar_lea.vmem %s60_s28, 32 }
  0x13   :  { %p1289_p3 = scmp.ne.s32.totalorder %s60_s28, %s1288_s23  ;;  %p1293_p4 = scmp.lt.s32.totalorder %s60_s28, %s60_s28 }
  0x14   :  { %p1294_p5 = scmp.lt.s32.totalorder %s1292_s24, %s1288_s23 }
  0x16   :  { %p1295_p6 = por %p1294_p5, %p1293_p4 }
  0x18   :  { %p1296_p7 = pnand %p1295_p6, %p1289_p3 }
  0x1a   :  { %1299 = shalt.err (!%p1296_p7)
}
  0x1b   :  { %62 = dma.hbm_to_vmem [thread:$0]  %s1986_s7, 16, %s60_s28, [#allocation6]  }
  0x1c   :  { %s1300_s0 = scalar_lea.hbm %s1989_s10, 16 }
  0x1d   :  { %p1301_p8 = scmp.ne.s32.totalorder %s1989_s10, %s1300_s0  ;;  %p1304_p9 = scmp.lt.u32.totalorder %s1300_s0, %s1989_s10 }
  0x1f   :  { %p1306_p10 = pnand %p1304_p9, %p1301_p8 }
  0x21   :  { %1309 = shalt.err (!%p1306_p10)
}
  0x22   :  { %s1310_s22 = scalar_lea.vmem %s84_s30, 16  ;;  %s1314_s2 = scalar_lea.vmem %s84_s30, 32 }
  0x23   :  { %p1311_p11 = scmp.ne.s32.totalorder %s84_s30, %s1310_s22  ;;  %p1315_p12 = scmp.lt.s32.totalorder %s84_s30, %s84_s30 }
  0x24   :  { %p1316_p13 = scmp.lt.s32.totalorder %s1314_s2, %s1310_s22 }
  0x26   :  { %p1317_p0 = por %p1316_p13, %p1315_p12 }
  0x28   :  { %p1318_p1 = pnand %p1317_p0, %p1311_p11 }
  0x2a   :  { %1321 = shalt.err (!%p1318_p1)
}
  0x2b   :  { %86 = dma.hbm_to_vmem [thread:$0]  %s1989_s10, 16, %s84_s30, [#allocation9]  }
  0x2c   :  { %s1536_s23 = smov [#allocation11]   ;;  %s1537_s25 = smov [#allocation2]  }
  0x2d   :  { %s105_s24 = sshll.u32 %s1536_s23, 4  ;;  %s37_s26 = sshll.u32 %s1537_s25, 4  ;;  %s106_s24 = int_to_ptr.vmem [resolvable:$true] %s105_s24  ;;  %s38_s26 = int_to_ptr.vmem [resolvable:$true] %s37_s26 }
  0x2e   :  { %s1322_s0 = scalar_lea.hbm %s1991_s12, 16 }
  0x2f   :  { %p1323_p2 = scmp.ne.s32.totalorder %s1991_s12, %s1322_s0  ;;  %p1326_p3 = scmp.lt.u32.totalorder %s1322_s0, %s1991_s12 }
  0x31   :  { %p1328_p4 = pnand %p1326_p3, %p1323_p2 }
  0x33   :  { %1331 = shalt.err (!%p1328_p4)
}
  0x34   :  { %s1332_s10 = scalar_lea.vmem %s106_s24, 16  ;;  %s1336_s30 = scalar_lea.vmem %s106_s24, 32 }
  0x35   :  { %p1333_p5 = scmp.ne.s32.totalorder %s106_s24, %s1332_s10  ;;  %p1337_p6 = scmp.lt.s32.totalorder %s106_s24, %s106_s24 }
  0x36   :  { %p1338_p7 = scmp.lt.s32.totalorder %s1336_s30, %s1332_s10 }
  0x38   :  { %p1339_p8 = por %p1338_p7, %p1337_p6 }
  0x3a   :  { %p1340_p9 = pnand %p1339_p8, %p1333_p5 }
  0x3c   :  { %1343 = shalt.err (!%p1340_p9)
}
  0x3d   :  { %108 = dma.hbm_to_vmem [thread:$0]  %s1991_s12, 16, %s106_s24, [#allocation12]  }
  0x3e   :  { %s2004_s23 = sld [smem:[#allocation27_spill]] }
  0x44   :  { %s1344_s25 = scalar_lea.hbm %s2004_s23, 32 }
  0x45   :  { %p1345_p10 = scmp.ne.s32.totalorder %s2004_s23, %s1344_s25  ;;  %p1348_p11 = scmp.lt.u32.totalorder %s1344_s25, %s2004_s23 }
  0x47   :  { %p1350_p12 = pnand %p1348_p11, %p1345_p10 }
  0x49   :  { %1353 = shalt.err (!%p1350_p12)
}
  0x4a   :  { %s1354_s1 = scalar_lea.vmem %s38_s26, 32  ;;  %p1359_p0 = scmp.lt.s32.totalorder %s38_s26, %s38_s26 }
  0x4b   :  { %p1355_p13 = scmp.ne.s32.totalorder %s38_s26, %s1354_s1  ;;  %p1360_p1 = scmp.lt.s32.totalorder %s1354_s1, %s1354_s1 }
  0x4d   :  { %p1361_p2 = por %p1360_p1, %p1359_p0 }
  0x4f   :  { %p1362_p3 = pnand %p1361_p2, %p1355_p13 }
  0x51   :  { %1365 = shalt.err (!%p1362_p3)
}
  0x52   :  { %40 = dma.hbm_to_vmem [thread:$0]  %s2004_s23, 32, %s38_s26, [#allocation3]  }
  0x53   :  { %s1538_s20 = smov [#allocation7]   ;;  %s1366_s22 = scalar_lea.hbm %s1987_s8, 512 }
  0x54   :  { %s68_s21 = sshll.u32 %s1538_s20, 4  ;;  %p1367_p4 = scmp.ne.s32.totalorder %s1987_s8, %s1366_s22  ;;  %s69_s21 = int_to_ptr.vmem [resolvable:$true] %s68_s21 }
  0x55   :  { %p1370_p5 = scmp.lt.u32.totalorder %s1366_s22, %s1987_s8 }
  0x57   :  { %p1372_p6 = pnand %p1370_p5, %p1367_p4 }
  0x59   :  { %1375 = shalt.err (!%p1372_p6)
}
  0x5a   :  { %s1376_s27 = scalar_lea.vmem %s69_s21, 512  ;;  %p1381_p8 = scmp.lt.s32.totalorder %s69_s21, %s69_s21 }
  0x5b   :  { %p1377_p7 = scmp.ne.s32.totalorder %s69_s21, %s1376_s27  ;;  %p1382_p9 = scmp.lt.s32.totalorder %s1376_s27, %s1376_s27 }
  0x5d   :  { %p1383_p10 = por %p1382_p9, %p1381_p8 }
  0x5f   :  { %p1384_p11 = pnand %p1383_p10, %p1377_p7 }
  0x61   :  { %1387 = shalt.err (!%p1384_p11)
}
  0x62   :  { %s1539_s26 = smov 128   ;;  %s1540_s23 = smov 8  }
  0x63   :  { %74 = dma.hbm_to_vmem [thread:$0]  %s1987_s8, 512, %s69_s21, [#allocation6], %s1539_s26, %s1539_s26, %s1540_s23  }
  0x64   :  { %s1541_s19 = smov [#allocation10]   ;;  %s1542_s12 = smov [#allocation13]  }
  0x65   :  { %s92_s1 = sshll.u32 %s1541_s19, 4  ;;  %s117_s24 = sshll.u32 %s1542_s12, 4  ;;  %s93_s1 = int_to_ptr.vmem [resolvable:$true] %s92_s1  ;;  %s118_s24 = int_to_ptr.vmem [resolvable:$true] %s117_s24 }
  0x66   :  { %s1388_s30 = scalar_lea.hbm %s1990_s11, 512 }
  0x67   :  { %p1389_p12 = scmp.ne.s32.totalorder %s1990_s11, %s1388_s30  ;;  %p1392_p13 = scmp.lt.u32.totalorder %s1388_s30, %s1990_s11 }
  0x69   :  { %p1394_p0 = pnand %p1392_p13, %p1389_p12 }
  0x6b   :  { %1397 = shalt.err (!%p1394_p0)
}
  0x6c   :  { %s1398_s8 = scalar_lea.vmem %s93_s1, 512  ;;  %p1403_p2 = scmp.lt.s32.totalorder %s93_s1, %s93_s1 }
  0x6d   :  { %p1399_p1 = scmp.ne.s32.totalorder %s93_s1, %s1398_s8  ;;  %p1404_p3 = scmp.lt.s32.totalorder %s1398_s8, %s1398_s8 }
  0x6f   :  { %p1405_p4 = por %p1404_p3, %p1403_p2 }
  0x71   :  { %p1406_p5 = pnand %p1405_p4, %p1399_p1 }
  0x73   :  { %1409 = shalt.err (!%p1406_p5)
}
  0x74   :  { %98 = dma.hbm_to_vmem [thread:$0]  %s1990_s11, 512, %s93_s1, [#allocation9], %s1539_s26, %s1539_s26, %s1540_s23  }
  0x75   :  { %s1410_s0 = scalar_lea.hbm %s1993_s14, 16 }
  0x76   :  { %p1411_p6 = scmp.ne.s32.totalorder %s1993_s14, %s1410_s0  ;;  %p1414_p7 = scmp.lt.u32.totalorder %s1410_s0, %s1993_s14 }
  0x78   :  { %p1416_p8 = pnand %p1414_p7, %p1411_p6 }
  0x7a   :  { %1419 = shalt.err (!%p1416_p8)
}
  0x7b   :  { %s1420_s30 = scalar_lea.vmem %s118_s24, 16  ;;  %s1424_s22 = scalar_lea.vmem %s118_s24, 32 }
  0x7c   :  { %p1421_p9 = scmp.ne.s32.totalorder %s118_s24, %s1420_s30  ;;  %p1425_p10 = scmp.lt.s32.totalorder %s118_s24, %s118_s24 }
  0x7d   :  { %p1426_p11 = scmp.lt.s32.totalorder %s1424_s22, %s1420_s30 }
  0x7f   :  { %p1427_p12 = por %p1426_p11, %p1425_p10 }
  0x81   :  { %p1428_p13 = pnand %p1427_p12, %p1421_p9 }
  0x83   :  { %1431 = shalt.err (!%p1428_p13)
}
  0x84   :  { %120 = dma.hbm_to_vmem [thread:$0]  %s1993_s14, 16, %s118_s24, [#allocation12]  }
  0x85   :  { %1520 = dma.done.wait [#allocation3], 32  }
  0x86   :  { %1521 = vsyncadd [#allocation3], 4294967264 }
  0x87   :  { %1522 = dma.done.wait [#allocation6], 528  }
  0x88   :  { %1523 = vsyncadd [#allocation6], 4294966768 }
  0x89   :  { %1524 = dma.done.wait [#allocation9], 528  }
  0x8a   :  { %1525 = vsyncadd [#allocation9], 4294966768 }
  0x8b   :  { %1526 = dma.done.wait [#allocation12], 32  }
  0x8c   :  { %1527 = vsyncadd [#allocation12], 4294967264  ;;  %v1543_v0 = vmov 0.0   ;;  %v150_v1 = vld [vmem:[%s1984_s5 + $0x8] sm:$0xff]  ;;  %v152_v2 = vld [vmem:[%s1984_s5 + $0x18] sm:$0xff]  ;;  %vm157_vm0 = vcmask 261120   ;;  %v323_v24 = vlaneseq }
  0x8d   :  { %225 = vmatprep.mubr.f32.mxu0 %v1543_v0  ;;  %v149_v3 = vld [vmem:[%s1984_s5] sm:$0xff]  ;;  %v1177_v4 = vpack.c.bf16 %v152_v2, %v150_v1  ;;  %v151_v5 = vld [vmem:[%s1984_s5 + $0x10] sm:$0xff]  ;;  %v154_v6 = vld [vmem:[%s1984_s5 + $0x28] sm:$0xff]  ;;  %v1544_v22 = vmov 1966171168   ;;  %vm392_vm1 = vcmask 1041409  }
  0x8e   :  { %v156_v7 = vld [vmem:[%s1984_s5 + $0x38] sm:$0xff]  ;;  %v1179_v8 = vpack.c.bf16 %v151_v5, %v149_v3  ;;  %v234_v10 = vld [vmem:[#allocation7] sm:$0xff]  ;;  %v235_v11 = vld [vmem:[#allocation7 + $0x8] sm:$0xff]  ;;  %v321_v23 = vunpack.c.l.s4 %v1544_v22  ;;  %v1776_v26 = vshrl.u32 %v323_v24, 7  ;;  %v383_v51 = vand.u32 127, %v323_v24  ;;  %s1547_s27 = smov 48  }
  0x8f   :  { %v1181_v9 = vpack.c.bf16 %v156_v7, %v154_v6  ;;  %v153_v12 = vld [vmem:[%s1984_s5 + $0x20] sm:$0xff]  ;;  %1178 = vmatprep.subr.bf16.mxu0 %v1177_v4  ;;  %v1185_v13 = vpack.c.bf16 %v235_v11, %v234_v10  ;;  %v155_v14 = vld [vmem:[%s1984_s5 + $0x30] sm:$0xff]  ;;  %s2005_s5 = sld [smem:[#allocation28_spill]]  ;;  %v233_v21 = vld [vmem:[%s1982_s3 + $0x8] sm:$0xff]  ;;  %vm395_vm2 = vcmask 58368   ;;  %v1545_v59 = vmov 0  }
  0x90   :  { %v236_v15 = vld [vmem:[#allocation7 + $0x10] sm:$0xff]  ;;  %1180 = vmatpush1.bf16.msra.mxu0 %v1179_v8  ;;  %v1183_v16 = vpack.c.bf16 %v155_v14, %v153_v12  ;;  %v237_v17 = vld [vmem:[#allocation7 + $0x18] sm:$0xff]  ;;  %v322_v25 = vunpack.c.0.s8 %v321_v23  ;;  %v1785_v31 = vsub.s32 0, %v1776_v26  ;;  %v386_v53 = vsub.s32 %v383_v51, %v1776_v26  ;;  %1251 = vset.pattern.permute.xlu0 %v1545_v59  ;;  %s1549_s7 = smov 16   ;;  %s2006_s24 = sld [smem:[#allocation29_spill]] }
  0x91   :  { %v232_v18 = vld [vmem:[%s1982_s3] sm:$0xff]  ;;  %1182 = vmatprep.subr.bf16.mxu0 %v1181_v9  ;;  %1186 = vmatprep.subr.bf16.mxu1 %v1185_v13  ;;  %v1189_v19 = vpack.c.bf16 %v237_v17, %v236_v15  ;;  %v406_v60 = vsub.s32 1, %v1776_v26  ;;  %vm1546_vm3 = vmmov 0   ;;  %vm461_vm4 = vcmask 64512   ;;  %s1551_s28 = smov 32   ;;  %s1552_s8 = smov 96  }
  0x92   :  { %1188 = vmatpush3.bf16.msra.mxu1 %v1185_v13  ;;  %1111 = vmatprep.mubr.msk.f32.mxu1 %vm157_vm0, %v232_v18  ;;  %v325_v27 = vsub.s32 %v322_v25, %v1776_v26  ;;  %v1056_v38 = vld [vmem:[%s1985_s6] ss:$0 sm:$0xff]  ;;  %v1057_v44 = vld [vmem:[#allocation5] ss:$0 sm:$0xff]  ;;  %v452_v18 = vld [vmem:[%s1983_s4 + $0x8] sm:$0xff]  ;;  %vm625_vm5 = vcmask 130048  }
  0x93   :  { %1190 = vmatprep.subr.bf16.mxu1 %v1189_v19  ;;  %1250 = vset.pattern.permute.xlu1 %v1545_v59  ;;  %v142_v51 = vld [vmem:[#allocation2] sm:$0x3]  ;;  %vm627_vm6 = vcmask 392192   ;;  %vm646_vm7 = vcmask 654336   ;;  %vm970_vm8 = vcmask 254976   ;;  %vm760_vm9 = vcmask 785408  }
  0x94   :  { %1184 = vmatpush1.bf16.msra.mxu0 %v1183_v16  ;;  %vm894_vm10 = vcmask 523264  }
  0x95   :  { %v1051_v20 = vld [vmem:[%s2005_s5 + $0x2] sm:$0x3]  ;;  %1114 = vmatprep.subr.mxu0 %v1543_v0  ;;  %v143_v26 = vld [vmem:[%s2005_s5] sm:$0x3] }
  0x96   :  { %1192 = vmatpush3.bf16.msra.mxu1 %v1189_v19  ;;  %v451_v19 = vld [vmem:[%s1983_s4] sm:$0xff] }
  0x97   :  { %1053 = vmatmul.mubr.msk.f32.vlgmr.msra.gmra.mrb[0].mxu0 %vm157_vm0, %v1051_v20  ;;  %1119 = vmatprep.subr.mxu1 %v1543_v0 }
  0x98   :  { %1115 = vmatpush3.msra.mxu0 %v451_v19  ;;  %1116 = vmatprep.mubr.msk.f32.mxu0 %vm1546_vm3, %v1543_v0 }
  0x99   :  { %1112 = vmatmul.mubr.msk.f32.vlgmr.msra.gmra.mrb[0].mxu1 %vm157_vm0, %v233_v21 }
  0x9a   :  { %1120 = vmatpush3.msra.mxu1 %v452_v18  ;;  %1121 = vmatprep.mubr.msk.f32.mxu1 %vm1546_vm3, %v1543_v0  ;;  %v1052_v18 = vld [vmem:[%s2006_s24 + $0x2] sm:$0x3] }
 0x16a   :  { %v1779_v28 = vpop.f32.mrb[0].mxu0 }
 0x16b   :  { %v326_v29 = vrot.slane %v1779_v28, %v325_v27  ;;  %v1782_v30 = vpop.f32.mrb[1].mxu0 }
 0x16c   :  { %v1113_v32 = vpop.f32.mrb[0].mxu1 }
 0x16d   :  { %v327_v33 = vcombine.high %v326_v29, %v326_v29  ;;  %v334_v34 = vrot.slane %v326_v29, %v325_v27  ;;  %v310_v35 = vpop.f32.mrb[1].mxu1  ;;  %v630_v29 = vld [vmem:[%s1988_s9 + $0x8] sm:$0xff] }
 0x16f   :  { %v341_v36 = vrot.slane %v327_v33, %v325_v27  ;;  %v345_v37 = vrot.slane %v334_v34, %v1785_v31  ;;  %v629_v27 = vld [vmem:[%s1988_s9] sm:$0xff]  ;;  %v631_v33 = vld [vmem:[%s1988_s9 + $0x10] sm:$0xff]  ;;  %v632_v34 = vld [vmem:[%s1988_s9 + $0x18] sm:$0xff] }
 0x171   :  { %v349_v39 = vrot.slane %v341_v36, %v1785_v31  ;;  %v352_v40 = vadd.f32 %v345_v37, %v310_v35  ;;  %v1197_v35 = vpack.c.bf16 %v632_v34, %v631_v33  ;;  %v633_v36 = vld [vmem:[%s1988_s9 + $0x20] sm:$0xff]  ;;  %v634_v37 = vld [vmem:[%s1988_s9 + $0x28] sm:$0xff] }
 0x173   :  { %v353_v41 = vadd.f32 %v1113_v32, %v349_v39  ;;  %v361_v42 = vadd.f32 %v1056_v38, %v352_v40  ;;  %v1194_v32 = vpack.c.bf16 %v630_v29, %v629_v27  ;;  %v635_v39 = vld [vmem:[%s1988_s9 + $0x30] sm:$0xff]  ;;  %v636_v40 = vld [vmem:[%s1988_s9 + $0x38] sm:$0xff] }
 0x175   :  { %v362_v43 = vadd.f32 %v1056_v38, %v353_v41  ;;  %1252 = vtanh.f32 %v361_v42  ;;  %v1200_v38 = vpack.c.bf16 %v634_v37, %v633_v36  ;;  %v1203_v41 = vpack.c.bf16 %v636_v40, %v635_v39  ;;  %v637_v42 = vld [vmem:[%s1988_s9 + $0x40] sm:$0xff]  ;;  %v880_v40 = vld [vmem:[%s1992_s13 + $0x8] sm:$0xff] }
 0x176   :  { %v879_v39 = vld [vmem:[%s1992_s13] sm:$0xff] }
 0x177   :  { %1254 = vtanh.f32 %v362_v43  ;;  %v638_v43 = vld [vmem:[%s1988_s9 + $0x48] sm:$0xff]  ;;  %s1550_s9 = smov 64  }
 0x17f   :  { %v1253_v45 = vpop.eup %1252 }
 0x180   :  { %v372_v46 = vmul.f32 %v1253_v45, %v1057_v44 }
 0x181   :  { %v1255_v47 = vpop.eup %1254 }
 0x182   :  { %v374_v48 = vsel %vm157_vm0, %v372_v46, 0.0  ;;  %v373_v49 = vmul.f32 %v1255_v47, %v1057_v44  ;;  %v1206_v44 = vpack.c.bf16 %v638_v43, %v637_v42  ;;  %v1215_v42 = vpack.c.bf16 %v880_v40, %v879_v39  ;;  %v882_v43 = vld [vmem:[%s1992_s13 + $0x18] sm:$0xff] }
 0x183   :  { %375 = vadd.xlane.f32.xlu0 %v374_v48 }
 0x184   :  { %v377_v50 = vsel %vm157_vm0, %v373_v49, 0.0 }
 0x187   :  { %378 = vadd.xlane.f32.xlu0 %v377_v50 }
 0x210   :  { %v376_v52 = vpop.xlane.xlu0 %375 }
 0x211   :  { %v387_v55 = vrot.slane %v376_v52, %v386_v53 }
 0x214   :  { %v379_v54 = vpop.xlane.xlu0 %378 }
 0x215   :  { %v391_v56 = vrot.slane %v379_v54, %v386_v53 }
 0x217   :  { %v393_v57 = vsel %vm392_vm1, %v391_v56, %v387_v55  ;;  %v1060_v56 = vld [vmem:[#allocation8] ss:$0 sm:$0xff] }
 0x218   :  { %v396_v58 = vsel %vm395_vm2, %v393_v57, -inf }
 0x219   :  { %397 = vmax.xlane.f32.xlu1 %v396_v58 }
 0x2a6   :  { %v398_v61 = vpop.xlane.xlu1 %397 }
 0x2a7   :  { %v403_v62 = vrot.slane %v398_v61, %v1785_v31  ;;  %v407_v63 = vrot.slane %v398_v61, %v406_v60  ;;  %v144_v61 = vld [vmem:[%s2006_s24] sm:$0x3] }
 0x2a9   :  { %v410_v1 = vsub.f32 %v376_v52, %v403_v62  ;;  %v411_v2 = vsub.f32 %v379_v54, %v407_v63 }
 0x2ab   :  { %v412_v3 = vmul.f32 1.442695, %v410_v1  ;;  %v414_v4 = vmul.f32 1.442695, %v411_v2 }
 0x2ad   :  { %1256 = vpow2.f32 %v412_v3 }
 0x2ae   :  { %1258 = vpow2.f32 %v414_v4 }
 0x2b7   :  { %v1257_v5 = vpop.eup %1256 }
 0x2b8   :  { %v1259_v6 = vpop.eup %1258  ;;  %419 = vperm.xlu1 %1250, %v1257_v5  }
 0x2b9   :  { %422 = vperm.xlu0 %1251, %v1259_v6  }
 0x337   :  { %v420_v7 = vpop.permute.xlu1 %419 }
 0x338   :  { %v423_v8 = vpop.permute.xlu0 %422  ;;  %v427_v9 = vrot.slane %v420_v7, %v386_v53 }
 0x339   :  { %v431_v10 = vrot.slane %v423_v8, %v386_v53 }
 0x33b   :  { %v432_v11 = vsel %vm392_vm1, %v431_v10, %v427_v9  ;;  %v748_v9 = vld [vmem:[#allocation10] sm:$0xff]  ;;  %v749_v10 = vld [vmem:[#allocation10 + $0x8] sm:$0xff] }
 0x33c   :  { %v434_v12 = vsel %vm395_vm2, %v432_v11, 0.0  ;;  %v750_v11 = vld [vmem:[#allocation10 + $0x10] sm:$0xff] }
 0x33d   :  { %435 = vadd.xlane.f32.xlu1 %v434_v12  ;;  %v1209_v12 = vpack.c.bf16 %v749_v10, %v748_v9 }
 0x3ca   :  { %v436_v13 = vpop.xlane.xlu1 %435 }
 0x3cb   :  { %1260 = vrcp.f32 %v436_v13  ;;  %v751_v13 = vld [vmem:[#allocation10 + $0x18] sm:$0xff] }
 0x3d5   :  { %v1261_v14 = vpop.eup %1260 }
 0x3d6   :  { %v446_v15 = vrot.slane %v1261_v14, %v406_v60  ;;  %v442_v17 = vrot.slane %v1261_v14, %v1785_v31  ;;  %v1548_v31 = vmov 0.0|0.0   ;;  %v1212_v14 = vpack.c.bf16 %v751_v13, %v750_v11 }
 0x3d7   :  { %1193 = vmatprep.subr.bf16.mxu0 %v1548_v31  ;;  %1208 = vmatprep.subr.bf16.mxu1 %v1548_v31 }
 0x3d8   :  { %v450_v16 = vmul.f32 %v1259_v6, %v446_v15  ;;  %v449_v20 = vmul.f32 %v1257_v5, %v442_v17 }
 0x3da   :  { %536 = vperm.xlu0 %1251, %v450_v16  }
 0x3de   :  { %455 = vperm.xlu0 %1251, %v449_v20  }
 0x3e2   :  { %622 = vrot.lane.b32.xlu0 %v143_v26, %s1547_s27 }
 0x459   :  { %v537_v21 = vpop.permute.xlu0 %536 }
 0x45a   :  { %v541_v22 = vrot.slane %v537_v21, %v386_v53 }
 0x45c   :  { %1122 = vmatmul.mubr.msk.f32.vlgmr.msra.gmra.mrb[2].mxu1 %vm461_vm4, %v541_v22 }
 0x45d   :  { %v456_v23 = vpop.permute.xlu0 %455  ;;  %1155 = vmatprep.mubr.msk.f32.mxu1 %vm1546_vm3, %v1543_v0  ;;  %1210 = vmatpush3.bf16.msra.mxu1 %v1209_v12 }
 0x45e   :  { %v460_v24 = vrot.slane %v456_v23, %v386_v53  ;;  %1211 = vmatprep.subr.bf16.mxu1 %v1548_v31 }
 0x460   :  { %1117 = vmatmul.mubr.msk.f32.vlgmr.msra.gmra.mrb[2].mxu0 %vm461_vm4, %v460_v24  ;;  %v985_v25 = vsel %vm392_vm1, %v541_v22, %v460_v24  ;;  %v1064_v22 = vld [vmem:[#allocation11] ss:$0 sm:$0xff] }
 0x461   :  { %1144 = vmatprep.mubr.msk.f32.mxu0 %vm1546_vm3, %v1543_v0  ;;  %987 = vst.msk [vmem:[#allocation18] sm:$0x3] %vm395_vm2, %v985_v25  ;;  %1195 = vmatpush3.bf16.msra.mxu0 %v1194_v32  ;;  %v623_v52 = vpop.permute.xlu0 %622 }
 0x462   :  { %1196 = vmatprep.subr.bf16.mxu0 %v1548_v31  ;;  %1213 = vmatpush3.bf16.msra.mxu1 %v1212_v14 }
 0x463   :  { %1214 = vmatprep.subr.bf16.mxu1 %v1548_v31 }
 0x465   :  { %1198 = vmatpush3.bf16.msra.mxu0 %v1197_v35 }
 0x466   :  { %1199 = vmatprep.subr.bf16.mxu0 %v1548_v31 }
 0x469   :  { %1201 = vmatpush3.bf16.msra.mxu0 %v1200_v38 }
 0x46a   :  { %1202 = vmatprep.subr.bf16.mxu0 %v1548_v31 }
 0x46d   :  { %1204 = vmatpush3.bf16.msra.mxu0 %v1203_v41  ;;  %v881_v41 = vld [vmem:[%s1992_s13 + $0x10] sm:$0xff] }
 0x46e   :  { %1205 = vmatprep.subr.bf16.mxu0 %v1548_v31 }
 0x471   :  { %1207 = vmatpush3.bf16.msra.mxu0 %v1206_v44  ;;  %v1218_v44 = vpack.c.bf16 %v882_v43, %v881_v41 }
 0x52f   :  { %v610_v45 = vpop.f32.mrb[2].mxu1 }
 0x530   :  { %v1123_v46 = vpop.f32.mrb[3].mxu1  ;;  %v616_v47 = vrot.slane %v610_v45, 7 }
 0x531   :  { %v883_v46 = vld [vmem:[%s1992_s13 + $0x20] sm:$0xff] }
 0x533   :  { %v530_v48 = vpop.f32.mrb[2].mxu0 }
 0x534   :  { %v1118_v49 = vpop.f32.mrb[3].mxu0  ;;  %v1858_v50 = vsel %vm392_vm1, %v616_v47, %v530_v48  ;;  %v884_v47 = vld [vmem:[%s1992_s13 + $0x28] sm:$0xff] }
 0x535   :  { %618 = vrot.lane.b32.xlu1 %v1858_v50, %s1549_s7  ;;  %v1221_v48 = vpack.c.bf16 %v884_v47, %v883_v46  ;;  %v885_v49 = vld [vmem:[%s1992_s13 + $0x30] sm:$0xff] }
 0x5a7   :  { %v619_v53 = vpop.permute.xlu1 %618 }
 0x5a8   :  { %v626_v54 = vsel %vm625_vm5, %v142_v51, %v619_v53  ;;  %v886_v51 = vld [vmem:[%s1992_s13 + $0x38] sm:$0xff]  ;;  %s1553_s13 = smov [#allocation15]  }
 0x5a9   :  { %v628_v55 = vsel %vm627_vm6, %v626_v54, %v623_v52  ;;  %v1224_v52 = vpack.c.bf16 %v886_v51, %v885_v49  ;;  %s1003_s2 = sshll.u32 %s1553_s13, 4  ;;  %s1004_s2 = int_to_ptr.vmem [resolvable:$true] %s1003_s2 }
 0x5aa   :  { %1145 = vmatmul.mubr.msk.f32.vlgmr.msra.gmra.mrb[4].mxu0 %vm646_vm7, %v628_v55  ;;  %s1432_s7 = scalar_lea.vmem %s1004_s2, 64  ;;  %p1437_p1 = scmp.lt.s32.totalorder %s1004_s2, %s1004_s2 }
 0x5ab   :  { %p1433_p0 = scmp.ne.s32.totalorder %s1004_s2, %s1432_s7  ;;  %p1438_p2 = scmp.lt.s32.totalorder %s1432_s7, %s1432_s7 }
 0x5ad   :  { %p1439_p3 = por %p1438_p2, %p1437_p1 }
 0x5af   :  { %p1440_p4 = pnand %p1439_p3, %p1433_p0 }
 0x67d   :  { %v716_v57 = vpop.f32.mrb[4].mxu0 }
 0x67e   :  { %v717_v58 = vadd.f32 %v1060_v56, %v716_v57  ;;  %v1146_v59 = vpop.f32.mrb[5].mxu0 }
 0x680   :  { %1262 = vtanh.f32 %v717_v58  ;;  %v1062_v62 = vmul.f32 -1.442695, %v717_v58 }
 0x682   :  { %1264 = vpow2.f32 %v1062_v62 }
 0x68a   :  { %v1263_v60 = vpop.eup %1262 }
 0x68b   :  { %733 = vrot.lane.b32.xlu0 %v1263_v60, %s1550_s9 }
 0x68c   :  { %v1265_v63 = vpop.eup %1264 }
 0x68d   :  { %v723_v1 = vadd.f32 1.0, %v1265_v63 }
 0x68f   :  { %728 = vrot.lane.b32.xlu0 %v144_v61, %s1551_s28  ;;  %1266 = vrcp.f32 %v723_v1 }
 0x699   :  { %v1267_v2 = vpop.eup %1266 }
 0x6fd   :  { %v734_v3 = vpop.permute.xlu0 %733 }
 0x6fe   :  { %v736_v4 = vmul.f32 %v1267_v2, %v734_v3 }
 0x700   :  { %738 = vrot.lane.b32.xlu0 %v736_v4, %s1551_s28 }
 0x701   :  { %v729_v5 = vpop.permute.xlu0 %728 }
 0x702   :  { %v731_v6 = vmul.f32 %v1267_v2, %v729_v5 }
 0x772   :  { %v739_v7 = vpop.permute.xlu0 %738 }
 0x773   :  { %v1867_v8 = vadd.f32 %v739_v7, %v731_v6 }
 0x775   :  { %1268 = vtanh.f32 %v1867_v8 }
 0x77f   :  { %v1269_v15 = vpop.eup %1268 }
 0x780   :  { %744 = vrot.lane.b32.xlu1 %v1269_v15, %s1550_s9 }
 0x784   :  { %756 = vrot.lane.b32.xlu1 %v1779_v28, %s1552_s8 }
 0x7f2   :  { %v745_v16 = vpop.permute.xlu1 %744 }
 0x7f3   :  { %v747_v17 = vmul.f32 %v1267_v2, %v745_v16 }
 0x7f5   :  { %753 = vrot.lane.b32.xlu0 %v747_v17, %s1551_s28 }
 0x7f6   :  { %v757_v20 = vpop.permute.xlu1 %756 }
 0x7f9   :  { %758 = vrot.lane.b32.xlu0 %v1782_v30, %s1552_s8 }
 0x7fd   :  { %851 = vrot.lane.b32.xlu0 %v1052_v18, %s1551_s28 }
 0x867   :  { %v754_v19 = vpop.permute.xlu0 %753 }
 0x868   :  { %971 = vst.msk [vmem:[#allocation15] sm:$0x3] %vm970_vm8, %v754_v19  ;;  %1156 = vmatmul.mubr.msk.f32.vlgmr.msra.gmra.mrb[4].mxu1 %vm157_vm0, %v754_v19 }
 0x869   :  { %1174 = vmatprep.mubr.msk.f32.mxu1 %vm1546_vm3, %v1543_v0  ;;  %1216 = vmatpush3.bf16.msra.mxu1 %v1215_v42 }
 0x86a   :  { %1217 = vmatprep.subr.bf16.mxu1 %v1548_v31 }
 0x86b   :  { %v759_v28 = vpop.permute.xlu0 %758 }
 0x86c   :  { %v761_v21 = vsel %vm760_vm9, %v757_v20, %v759_v28 }
 0x86d   :  { %1219 = vmatpush3.bf16.msra.mxu1 %v1218_v44 }
 0x86e   :  { %1220 = vmatprep.subr.bf16.mxu1 %v1548_v31 }
 0x86f   :  { %v852_v35 = vpop.permute.xlu0 %851 }
 0x871   :  { %1222 = vmatpush3.bf16.msra.mxu1 %v1221_v48 }
 0x872   :  { %1223 = vmatprep.subr.bf16.mxu1 %v1548_v31 }
 0x875   :  { %1225 = vmatpush3.bf16.msra.mxu1 %v1224_v52 }
 0x93b   :  { %v831_v30 = vpop.f32.mrb[4].mxu1 }
 0x93c   :  { %v832_v23 = vadd.f32 %v831_v30, %v761_v21  ;;  %v1157_v24 = vpop.f32.mrb[5].mxu1 }
 0x93e   :  { %v842_v25 = vadd.f32 %v1064_v22, %v832_v23 }
 0x940   :  { %1270 = vtanh.f32 %v842_v25  ;;  %v1065_v27 = vmul.f32 -1.442695, %v842_v25 }
 0x942   :  { %1272 = vpow2.f32 %v1065_v27 }
 0x94a   :  { %v1271_v26 = vpop.eup %1270 }
 0x94b   :  { %856 = vrot.lane.b32.xlu1 %v1271_v26, %s1550_s9 }
 0x94c   :  { %v1273_v29 = vpop.eup %1272 }
 0x94d   :  { %v846_v32 = vadd.f32 1.0, %v1273_v29 }
 0x94f   :  { %1274 = vrcp.f32 %v846_v32 }
 0x959   :  { %v1275_v33 = vpop.eup %1274 }
 0x95a   :  { %v854_v36 = vmul.f32 %v1275_v33, %v852_v35 }
 0x9bd   :  { %v857_v0 = vpop.permute.xlu1 %856 }
 0x9be   :  { %v859_v34 = vmul.f32 %v1275_v33, %v857_v0 }
 0x9c0   :  { %861 = vrot.lane.b32.xlu1 %v859_v34, %s1551_s28 }
 0xa32   :  { %v862_v37 = vpop.permute.xlu1 %861 }
 0xa33   :  { %v864_v38 = vadd.f32 %v862_v37, %v854_v36 }
 0xa35   :  { %1276 = vtanh.f32 %v864_v38 }
 0xa3f   :  { %v1277_v45 = vpop.eup %1276 }
 0xa40   :  { %867 = vrot.lane.b32.xlu0 %v1277_v45, %s1550_s9 }
 0xa44   :  { %875 = vrot.lane.b32.xlu0 %v1858_v50, %s1551_s28 }
 0xa48   :  { %980 = vrot.lane.b32.xlu0 %v864_v38, %s1552_s8 }
 0xab2   :  { %v868_v53 = vpop.permute.xlu0 %867 }
 0xab3   :  { %v870_v54 = vmul.f32 %v1275_v33, %v868_v53 }
 0xab5   :  { %872 = vrot.lane.b32.xlu1 %v870_v54, %s1551_s28 }
 0xab6   :  { %v876_v55 = vpop.permute.xlu0 %875 }
 0xab9   :  { %975 = vrot.lane.b32.xlu1 %v1867_v8, %s1552_s8 }
 0xaba   :  { %v981_v56 = vpop.permute.xlu0 %980 }
 0xabb   :  { %984 = vst.msk [vmem:[#allocation17 + $0x2] sm:$0x3] %vm970_vm8, %v981_v56 }
 0xb27   :  { %v873_v50 = vpop.permute.xlu1 %872 }
 0xb28   :  { %v878_v57 = vsel %vm157_vm0, %v873_v50, %v876_v55  ;;  %973 = vst.msk [vmem:[#allocation15 + $0x2] sm:$0x3] %vm970_vm8, %v873_v50 }
 0xb29   :  { %1175 = vmatmul.mubr.msk.f32.vlgmr.msra.gmra.mrb[6].mxu1 %vm894_vm10, %v878_v57 }
 0xb2b   :  { %v976_v31 = vpop.permute.xlu1 %975 }
 0xb2c   :  { %978 = vst.msk [vmem:[#allocation17] sm:$0x3] %vm970_vm8, %v976_v31 }
 0xb2d   :  { %1443 = shalt.err (!%p1440_p4)
}
 0xb2e   :  { %s1444_s4 = scalar_lea.hbm %s1995_s16, 64 }
 0xb2f   :  { %p1445_p5 = scmp.ne.s32.totalorder %s1995_s16, %s1444_s4  ;;  %p1448_p6 = scmp.lt.u32.totalorder %s1444_s4, %s1995_s16 }
 0xb31   :  { %p1450_p7 = pnand %p1448_p6, %p1445_p5 }
 0xb33   :  { %1453 = shalt.err (!%p1450_p7)
}
 0xb34   :  { %s1554_s27 = smov 2   ;;  %s1555_s19 = smov [#allocation17]  }
 0xb35   :  { %1009 = dma.vmem_to_hbm [thread:$0]  %s1004_s2, 64, %s1995_s16, [#allocation16], %s1551_s28, %s1551_s28, %s1554_s27  }
 0xb36   :  { %s1015_s12 = sshll.u32 %s1555_s19, 4  ;;  %s1016_s12 = int_to_ptr.vmem [resolvable:$true] %s1015_s12 }
 0xb37   :  { %s1454_s20 = scalar_lea.vmem %s1016_s12, 64  ;;  %p1459_p9 = scmp.lt.s32.totalorder %s1016_s12, %s1016_s12 }
 0xb38   :  { %p1455_p8 = scmp.ne.s32.totalorder %s1016_s12, %s1454_s20  ;;  %p1460_p10 = scmp.lt.s32.totalorder %s1454_s20, %s1454_s20 }
 0xb3a   :  { %p1461_p11 = por %p1460_p10, %p1459_p9 }
 0xb3c   :  { %p1462_p12 = pnand %p1461_p11, %p1455_p8 }
 0xb3e   :  { %1465 = shalt.err (!%p1462_p12)
}
 0xb3f   :  { %s1466_s22 = scalar_lea.hbm %s1996_s17, 64 }
 0xb40   :  { %p1467_p13 = scmp.ne.s32.totalorder %s1996_s17, %s1466_s22  ;;  %p1470_p0 = scmp.lt.u32.totalorder %s1466_s22, %s1996_s17 }
 0xb42   :  { %p1472_p1 = pnand %p1470_p0, %p1467_p13 }
 0xb44   :  { %1475 = shalt.err (!%p1472_p1)
}
 0xb45   :  { %1021 = dma.vmem_to_hbm [thread:$0]  %s1016_s12, 64, %s1996_s17, [#allocation16], %s1551_s28, %s1551_s28, %s1554_s27  }
 0xb46   :  { %s1556_s1 = smov [#allocation18]  }
 0xb47   :  { %s1028_s6 = sshll.u32 %s1556_s1, 4  ;;  %s1029_s6 = int_to_ptr.vmem [resolvable:$true] %s1028_s6 }
 0xb48   :  { %s1476_s13 = scalar_lea.vmem %s1029_s6, 32  ;;  %p1481_p3 = scmp.lt.s32.totalorder %s1029_s6, %s1029_s6 }
 0xb49   :  { %p1477_p2 = scmp.ne.s32.totalorder %s1029_s6, %s1476_s13  ;;  %p1482_p4 = scmp.lt.s32.totalorder %s1476_s13, %s1476_s13 }
 0xb4b   :  { %p1483_p5 = por %p1482_p4, %p1481_p3 }
 0xb4d   :  { %p1484_p6 = pnand %p1483_p5, %p1477_p2 }
 0xb4f   :  { %1487 = shalt.err (!%p1484_p6)
}
 0xb50   :  { %s1488_s9 = scalar_lea.hbm %s1997_s18, 32 }
 0xb51   :  { %p1489_p7 = scmp.ne.s32.totalorder %s1997_s18, %s1488_s9  ;;  %p1492_p8 = scmp.lt.u32.totalorder %s1488_s9, %s1997_s18 }
 0xb53   :  { %p1494_p9 = pnand %p1492_p8, %p1489_p7 }
 0xb55   :  { %1497 = shalt.err (!%p1494_p9)
}
 0xb56   :  { %1031 = dma.vmem_to_hbm [thread:$0]  %s1029_s6, 32, %s1997_s18, [#allocation19]   ;;  %v1066_v58 = vld [vmem:[#allocation13] ss:$0 sm:$0xff] }
 0xb57   :  { %s1557_s21 = smov [#allocation14]  }
 0xb58   :  { %s994_s25 = sshll.u32 %s1557_s21, 4  ;;  %s995_s25 = int_to_ptr.vmem [resolvable:$true] %s994_s25 }
 0xb59   :  { %s1498_s27 = scalar_lea.vmem %s995_s25, 32  ;;  %p1503_p11 = scmp.lt.s32.totalorder %s995_s25, %s995_s25 }
 0xb5a   :  { %p1499_p10 = scmp.ne.s32.totalorder %s995_s25, %s1498_s27  ;;  %p1504_p12 = scmp.lt.s32.totalorder %s1498_s27, %s1498_s27 }
 0xb5c   :  { %p1505_p13 = por %p1504_p12, %p1503_p11 }
 0xb5e   :  { %p1506_p0 = pnand %p1505_p13, %p1499_p10 }
 0xbfc   :  { %v964_v59 = vpop.f32.mrb[6].mxu1 }
 0xbfd   :  { %v965_v60 = vadd.f32 %v1066_v58, %v964_v59  ;;  %v1176_v61 = vpop.f32.mrb[7].mxu1 }
 0xbff   :  { %968 = vst.msk [vmem:[#allocation14] sm:$0x3] %vm395_vm2, %v965_v60 }
 0xc00   :  { %1509 = shalt.err (!%p1506_p0)
}
 0xc01   :  { %s1510_s18 = scalar_lea.hbm %s1994_s15, 32 }
 0xc02   :  { %p1511_p1 = scmp.ne.s32.totalorder %s1994_s15, %s1510_s18  ;;  %p1514_p2 = scmp.lt.u32.totalorder %s1510_s18, %s1994_s15 }
 0xc04   :  { %p1516_p3 = pnand %p1514_p2, %p1511_p1 }
 0xc06   :  { %1519 = shalt.err (!%p1516_p3)
}
 0xc07   :  { %997 = dma.vmem_to_hbm [thread:$0]  %s995_s25, 32, %s1994_s15, [#allocation4]  }
 0xc08   :  { %1528 = dma.done.wait [#allocation4], 32  }
 0xc09   :  { %1529 = vsyncadd [#allocation4], 4294967264 }
 0xc0a   :  { %1530 = dma.done.wait [#allocation16], 128  }
 0xc0b   :  { %1531 = vsyncadd [#allocation16], 4294967168 }
 0xc0c   :  { %1532 = dma.done.wait [#allocation19], 32  }
 0xc0d   :  { %1533 = vsyncadd [#allocation19], 4294967264 }
 0xc0e   :  { %1044 = vsyncpa [#allocation3], 1 }
 0xc0f   :  { %1045 = vsyncpa [#allocation6], 1 }
 0xc10   :  { %1046 = vsyncpa [#allocation9], 1 }
 0xc11   :  { %1047 = vsyncpa [#allocation12], 1 }
 0xc12   :  { %1048 = vsyncpa [#allocation4], 1 }
 0xc13   :  { %1049 = vsyncpa [#allocation16], 1 }
 0xc14   :  { %1050 = vsyncpa [#allocation19], 1 }

</bundles_post_ra>
